<compile_context>
chip_gen: v5e
topology: v5e:2x2
jax: 0.10.0
libtpu: 0.0.40
codegen_flags: <defaults>
</compile_context>

<pallas_src>
import functools

import jax
import jax.numpy as jnp
from jax.experimental import pallas as pl
from jax.experimental.pallas import tpu as pltpu

LANE = 128               # padded hidden width (50/60/50 all <= 128)
SINGLE_BLOCK_ROWS = 1024 # up to this many rows: one resident block, grid=(1,)
MAX_TB = 2048            # per-step batch-tile cap for large batches

_HI = jax.lax.Precision.HIGHEST


def _round_up(n, m):
    return ((n + m - 1) // m) * m


def _cdiv(a, b):
    return -(-a // b)


def _choose_tb(batch):
    """Single resident block for small batches; for large batches, >=2 grid
    steps (v7x megacore can shard the 'parallel' axis) of <= MAX_TB rows."""
    b8 = _round_up(max(batch, 1), 8)
    if b8 <= SINGLE_BLOCK_ROWS:
        return b8
    n_steps = max(2, _cdiv(b8, MAX_TB))
    return _round_up(_cdiv(b8, n_steps), 8)


def _pad2(a, rows, cols):
    r, c = a.shape
    return jnp.pad(a, ((0, rows - r), (0, cols - c)))


def _phi_mlp_kernel(x_ref,
                    w1_ref, b1_ref,
                    w2_ref, b2_ref,
                    w3_ref, b3_ref,
                    w4_ref, b4_ref,
                    o_ref):
    # One (TB, dim_x) batch tile per grid step; weights/biases are
    # grid-invariant VMEM blocks (constant index_map -> no re-DMA).
    h = jnp.dot(x_ref[...], w1_ref[...],
                preferred_element_type=jnp.float32, precision=_HI)
    h = jnp.maximum(h + b1_ref[...], 0.0)

    h = jnp.dot(h, w2_ref[...],
                preferred_element_type=jnp.float32, precision=_HI)
    h = jnp.maximum(h + b2_ref[...], 0.0)

    h = jnp.dot(h, w3_ref[...],
                preferred_element_type=jnp.float32, precision=_HI)
    h = jnp.maximum(h + b3_ref[...], 0.0)

    h = jnp.dot(h, w4_ref[...],
                preferred_element_type=jnp.float32, precision=_HI)
    # No ReLU on layer 4; the ones-column lives in b4 lane dim_a-1 (its w4
    # column is all zeros), so that output lane is exactly 1.0.
    o_ref[...] = (h + b4_ref[...]).astype(o_ref.dtype)


def prepare_phi_net_params(params, dim_a):
    """Pad params once (hoisted out of the per-call path).

    w1: (dim_x, 128)   -- columns zero-padded (hidden lanes 50..127 = 0)
    w2: (128, 128), w3: (128, 128) -- rows & columns zero-padded
    w4: (128, dim_a)   -- rows zero-padded; column dim_a-1 is all zeros
    b1/b2/b3: (1, 128) -- zero-padded (relu(0)=0 keeps padding exact)
    b4: (1, dim_a)     -- lane dim_a-1 set to 1.0 (the baked ones-column;
                          keep w4's last column zero if this ever changes).
    """
    assert dim_a <= LANE
    dim_x = params["w1"].shape[0]
    pp = {
        "w1": _pad2(params["w1"].astype(jnp.float32), dim_x, LANE),
        "b1": _pad2(params["b1"].astype(jnp.float32)[None, :], 1, LANE),
        "w2": _pad2(params["w2"].astype(jnp.float32), LANE, LANE),
        "b2": _pad2(params["b2"].astype(jnp.float32)[None, :], 1, LANE),
        "w3": _pad2(params["w3"].astype(jnp.float32), LANE, LANE),
        "b3": _pad2(params["b3"].astype(jnp.float32)[None, :], 1, LANE),
        "w4": _pad2(params["w4"].astype(jnp.float32), LANE, dim_a),
        "b4": _pad2(params["b4"].astype(jnp.float32)[None, :], 1, dim_a),
    }
    pp["b4"] = pp["b4"].at[0, dim_a - 1].set(1.0)
    return pp


@functools.partial(jax.jit, static_argnames=("dim_a",))
def phi_net_forward(x, padded_params, *, dim_a):
    """Forward pass of Phi_Net.

    x: (B, dim_x) or (dim_x,) float32
    padded_params: output of prepare_phi_net_params
    returns: (B, dim_a) or (dim_a,); last feature column is exactly 1.0.
    """
    squeeze = (x.ndim == 1)
    if squeeze:
        x = x[None, :]
    B, dim_x = x.shape
    assert dim_a <= LANE

    x = x.astype(jnp.float32)
    TB = _choose_tb(B)
    grid = (pl.cdiv(B, TB),)

    x_spec = pl.BlockSpec((TB, dim_x), lambda i: (i, 0))
    out_spec = pl.BlockSpec((TB, dim_a), lambda i: (i, 0))

    def const_spec(shape):   # grid-invariant operand (weights / biases)
        return pl.BlockSpec(shape, lambda i: (0, 0))

    # Narrow in/out byte counts; padded-lane MXU flops.
    param_bytes = 4 * (dim_x * LANE + LANE
                       + LANE * LANE + LANE
                       + LANE * LANE + LANE
                       + LANE * dim_a + dim_a)
    cost = pl.CostEstimate(
        flops=2 * B * (dim_x * LANE + LANE * LANE + LANE * LANE + LANE * dim_a),
        transcendentals=0,
        bytes_accessed=4 * B * (dim_x + dim_a) + param_bytes,
    )

    pp = padded_params
    out = pl.pallas_call(
        _phi_mlp_kernel,
        out_shape=jax.ShapeDtypeStruct((B, dim_a), jnp.float32),
        grid_spec=pl.GridSpec(
            grid=grid,
            in_specs=[x_spec,
                      const_spec((dim_x, LANE)), const_spec((1, LANE)),
                      const_spec((LANE, LANE)), const_spec((1, LANE)),
                      const_spec((LANE, LANE)), const_spec((1, LANE)),
                      const_spec((LANE, dim_a)), const_spec((1, dim_a))],
            out_specs=out_spec,
        ),
        compiler_params=pltpu.CompilerParams(
            dimension_semantics=("parallel",)),
        cost_estimate=cost,
    )(x,
      pp["w1"], pp["b1"], pp["w2"], pp["b2"],
      pp["w3"], pp["b3"], pp["w4"], pp["b4"])

    if squeeze:
        out = out[0]
    return out


def init_phi_net_params(key, dim_x, dim_a):
    """Deterministic synthetic init (weights stored as (in, out) = W.T)."""
    dims = [dim_x, 50, 60, 50, dim_a - 1]
    params = {}
    for layer in range(4):
        key, kw, kb = jax.random.split(key, 3)
        fan_in, fan_out = dims[layer], dims[layer + 1]
        bound = 1.0 / jnp.sqrt(fan_in)
        params[f"w{layer+1}"] = jax.random.uniform(
            kw, (fan_in, fan_out), jnp.float32, -bound, bound)
        params[f"b{layer+1}"] = jax.random.uniform(
            kb, (fan_out,), jnp.float32, -bound, bound)
    return params


def _reference_forward(x, params):
    h = jnp.maximum(jnp.dot(x, params["w1"], precision=_HI) + params["b1"], 0.0)
    h = jnp.maximum(jnp.dot(h, params["w2"], precision=_HI) + params["b2"], 0.0)
    h = jnp.maximum(jnp.dot(h, params["w3"], precision=_HI) + params["b3"], 0.0)
    h = jnp.dot(h, params["w4"], precision=_HI) + params["b4"]
    ones = jnp.ones(h.shape[:-1] + (1,), h.dtype)
    return jnp.concatenate([h, ones], axis=-1)


if __name__ == "__main__":
    dim_x, dim_a = 11, 4   # options['dim_x']=11, options['dim_a']=4

    key = jax.random.PRNGKey(0)
    key, kx_small, kx_large, kx_1d = jax.random.split(key, 4)
    params = init_phi_net_params(key, dim_x, dim_a)
    padded_params = prepare_phi_net_params(params, dim_a)

    # 1) small batch -> single resident block, grid=(1,)
    x = jax.random.normal(kx_small, (8, dim_x), jnp.float32)
    out = jax.block_until_ready(phi_net_forward(x, padded_params, dim_a=dim_a))
    ref = _reference_forward(x, params)
    assert out.shape == (8, dim_a), out.shape
    assert jnp.allclose(out, ref, atol=1e-4, rtol=1e-4), "mismatch (small batch)"
    assert jnp.all(out[:, -1] == 1.0), "last column must be ones"

    # 2) larger batch, not tile-divisible -> grid=(2,) parallel steps with a
    #    masked partial tail block (exercises the no-row-padding path)
    x2 = jax.random.normal(kx_large, (1030, dim_x), jnp.float32)
    out2 = jax.block_until_ready(phi_net_forward(x2, padded_params, dim_a=dim_a))
    ref2 = _reference_forward(x2, params)
    assert out2.shape == (1030, dim_a), out2.shape
    assert jnp.allclose(out2, ref2, atol=1e-4, rtol=1e-4), "mismatch (large batch)"
    assert jnp.all(out2[:, -1] == 1.0), "last column must be ones"

    # 3) 1-D input path (matches torch.cat([x, torch.ones(1)]))
    x1 = jax.random.normal(kx_1d, (dim_x,), jnp.float32)
    out1 = jax.block_until_ready(phi_net_forward(x1, padded_params, dim_a=dim_a))
    ref1 = _reference_forward(x1, params)
    assert out1.shape == (dim_a,), out1.shape
    assert jnp.allclose(out1, ref1, atol=1e-4, rtol=1e-4), "mismatch (1-D input)"
    assert out1[-1] == 1.0, "last element must be one"

    print("KERNEL_OK")
</pallas_src>

<mosaic_0001>
module attributes {stable_mosaic.version = 11 : i64} {
  func.func @_phi_mlp_kernel(%arg0: i32, %arg1: memref<8x11xf32, #tpu.memory_space<vmem>>, %arg2: memref<11x128xf32, #tpu.memory_space<vmem>>, %arg3: memref<1x128xf32, #tpu.memory_space<vmem>>, %arg4: memref<128x128xf32, #tpu.memory_space<vmem>>, %arg5: memref<1x128xf32, #tpu.memory_space<vmem>>, %arg6: memref<128x128xf32, #tpu.memory_space<vmem>>, %arg7: memref<1x128xf32, #tpu.memory_space<vmem>>, %arg8: memref<128x4xf32, #tpu.memory_space<vmem>>, %arg9: memref<1x4xf32, #tpu.memory_space<vmem>>, %arg10: memref<8x4xf32, #tpu.memory_space<vmem>>) attributes {dimension_semantics = [#tpu.dimension_semantics<parallel>], iteration_bounds = array<i64: 1>, scalar_prefetch = 0 : i64, scratch_operands = 0 : i64, tpu.core_type = #tpu.core_type<tc>, window_params = [{transform_indices = @transform_0, window_bounds = array<i64: 8, 11>}, {pipeline_mode = #tpu.pipeline_mode<synchronous>, transform_indices = @transform_1, window_bounds = array<i64: 11, 128>}, {pipeline_mode = #tpu.pipeline_mode<synchronous>, transform_indices = @transform_2, window_bounds = array<i64: 1, 128>}, {pipeline_mode = #tpu.pipeline_mode<synchronous>, transform_indices = @transform_3, window_bounds = array<i64: 128, 128>}, {pipeline_mode = #tpu.pipeline_mode<synchronous>, transform_indices = @transform_4, window_bounds = array<i64: 1, 128>}, {pipeline_mode = #tpu.pipeline_mode<synchronous>, transform_indices = @transform_5, window_bounds = array<i64: 128, 128>}, {pipeline_mode = #tpu.pipeline_mode<synchronous>, transform_indices = @transform_6, window_bounds = array<i64: 1, 128>}, {pipeline_mode = #tpu.pipeline_mode<synchronous>, transform_indices = @transform_7, window_bounds = array<i64: 128, 4>}, {pipeline_mode = #tpu.pipeline_mode<synchronous>, transform_indices = @transform_8, window_bounds = array<i64: 1, 4>}, {transform_indices = @transform_9, window_bounds = array<i64: 8, 4>}]} {
    %c0 = arith.constant 0 : index
    %c0_0 = arith.constant 0 : index
    %0 = vector.load %arg1[%c0, %c0_0] : memref<8x11xf32, #tpu.memory_space<vmem>>, vector<8x11xf32>
    %c0_1 = arith.constant 0 : index
    %c0_2 = arith.constant 0 : index
    %1 = vector.load %arg2[%c0_1, %c0_2] : memref<11x128xf32, #tpu.memory_space<vmem>>, vector<11x128xf32>
    %cst = arith.constant dense<0.000000e+00> : vector<8x128xf32>
    %2 = tpu.matmul %0, %1, %cst {dimension_numbers = #tpu.dot_dimension_numbers<[1], [0], [0], [1], [0, 0, 1, 1], [], []>, precision = #tpu.contract_precision<fp32>} : vector<8x11xf32>, vector<11x128xf32>, vector<8x128xf32> -> vector<8x128xf32>
    %c0_3 = arith.constant 0 : index
    %c0_4 = arith.constant 0 : index
    %3 = vector.load %arg3[%c0_3, %c0_4] : memref<1x128xf32, #tpu.memory_space<vmem>>, vector<1x128xf32>
    %4 = vector.broadcast %3 : vector<1x128xf32> to vector<8x128xf32>
    %5 = arith.addf %2, %4 : vector<8x128xf32>
    %cst_5 = arith.constant 0.000000e+00 : f32
    %6 = vector.broadcast %cst_5 : f32 to vector<8x128xf32>
    %7 = arith.maximumf %5, %6 : vector<8x128xf32>
    %c0_6 = arith.constant 0 : index
    %c0_7 = arith.constant 0 : index
    %8 = vector.load %arg4[%c0_6, %c0_7] : memref<128x128xf32, #tpu.memory_space<vmem>>, vector<128x128xf32>
    %cst_8 = arith.constant dense<0.000000e+00> : vector<8x128xf32>
    %9 = tpu.matmul %7, %8, %cst_8 {dimension_numbers = #tpu.dot_dimension_numbers<[1], [0], [0], [1], [0, 0, 1, 1], [], []>, precision = #tpu.contract_precision<fp32>} : vector<8x128xf32>, vector<128x128xf32>, vector<8x128xf32> -> vector<8x128xf32>
    %c0_9 = arith.constant 0 : index
    %c0_10 = arith.constant 0 : index
    %10 = vector.load %arg5[%c0_9, %c0_10] : memref<1x128xf32, #tpu.memory_space<vmem>>, vector<1x128xf32>
    %11 = vector.broadcast %10 : vector<1x128xf32> to vector<8x128xf32>
    %12 = arith.addf %9, %11 : vector<8x128xf32>
    %cst_11 = arith.constant 0.000000e+00 : f32
    %13 = vector.broadcast %cst_11 : f32 to vector<8x128xf32>
    %14 = arith.maximumf %12, %13 : vector<8x128xf32>
    %c0_12 = arith.constant 0 : index
    %c0_13 = arith.constant 0 : index
    %15 = vector.load %arg6[%c0_12, %c0_13] : memref<128x128xf32, #tpu.memory_space<vmem>>, vector<128x128xf32>
    %cst_14 = arith.constant dense<0.000000e+00> : vector<8x128xf32>
    %16 = tpu.matmul %14, %15, %cst_14 {dimension_numbers = #tpu.dot_dimension_numbers<[1], [0], [0], [1], [0, 0, 1, 1], [], []>, precision = #tpu.contract_precision<fp32>} : vector<8x128xf32>, vector<128x128xf32>, vector<8x128xf32> -> vector<8x128xf32>
    %c0_15 = arith.constant 0 : index
    %c0_16 = arith.constant 0 : index
    %17 = vector.load %arg7[%c0_15, %c0_16] : memref<1x128xf32, #tpu.memory_space<vmem>>, vector<1x128xf32>
    %18 = vector.broadcast %17 : vector<1x128xf32> to vector<8x128xf32>
    %19 = arith.addf %16, %18 : vector<8x128xf32>
    %cst_17 = arith.constant 0.000000e+00 : f32
    %20 = vector.broadcast %cst_17 : f32 to vector<8x128xf32>
    %21 = arith.maximumf %19, %20 : vector<8x128xf32>
    %c0_18 = arith.constant 0 : index
    %c0_19 = arith.constant 0 : index
    %22 = vector.load %arg8[%c0_18, %c0_19] : memref<128x4xf32, #tpu.memory_space<vmem>>, vector<128x4xf32>
    %cst_20 = arith.constant dense<0.000000e+00> : vector<8x4xf32>
    %23 = tpu.matmul %21, %22, %cst_20 {dimension_numbers = #tpu.dot_dimension_numbers<[1], [0], [0], [1], [0, 0, 1, 1], [], []>, precision = #tpu.contract_precision<fp32>} : vector<8x128xf32>, vector<128x4xf32>, vector<8x4xf32> -> vector<8x4xf32>
    %c0_21 = arith.constant 0 : index
    %c0_22 = arith.constant 0 : index
    %24 = vector.load %arg9[%c0_21, %c0_22] : memref<1x4xf32, #tpu.memory_space<vmem>>, vector<1x4xf32>
    %25 = vector.broadcast %24 : vector<1x4xf32> to vector<8x4xf32>
    %26 = arith.addf %23, %25 : vector<8x4xf32>
    %c0_23 = arith.constant 0 : index
    %c0_24 = arith.constant 0 : index
    %27 = vector.load %arg10[%c0_23, %c0_24] : memref<8x4xf32, #tpu.memory_space<vmem>>, vector<8x4xf32>
    tpu.vector_store %arg10[%c0_23, %c0_24], %26 {strides = array<i32>} : memref<8x4xf32, #tpu.memory_space<vmem>>, vector<8x4xf32>,
    return
  }
  func.func @transform_0(%arg0: i32) -> (i32, i32) {
    %c0_i32 = arith.constant 0 : i32
    %c0_i32_0 = arith.constant 0 : i32
    return %arg0, %c0_i32 : i32, i32
  }
  func.func @transform_1(%arg0: i32) -> (i32, i32) {
    %c0_i32 = arith.constant 0 : i32
    %c0_i32_0 = arith.constant 0 : i32
    %c0_i32_1 = arith.constant 0 : i32
    return %c0_i32, %c0_i32_0 : i32, i32
  }
  func.func @transform_2(%arg0: i32) -> (i32, i32) {
    %c0_i32 = arith.constant 0 : i32
    %c0_i32_0 = arith.constant 0 : i32
    %c0_i32_1 = arith.constant 0 : i32
    return %c0_i32, %c0_i32_0 : i32, i32
  }
  func.func @transform_3(%arg0: i32) -> (i32, i32) {
    %c0_i32 = arith.constant 0 : i32
    %c0_i32_0 = arith.constant 0 : i32
    %c0_i32_1 = arith.constant 0 : i32
    return %c0_i32, %c0_i32_0 : i32, i32
  }
  func.func @transform_4(%arg0: i32) -> (i32, i32) {
    %c0_i32 = arith.constant 0 : i32
    %c0_i32_0 = arith.constant 0 : i32
    %c0_i32_1 = arith.constant 0 : i32
    return %c0_i32, %c0_i32_0 : i32, i32
  }
  func.func @transform_5(%arg0: i32) -> (i32, i32) {
    %c0_i32 = arith.constant 0 : i32
    %c0_i32_0 = arith.constant 0 : i32
    %c0_i32_1 = arith.constant 0 : i32
    return %c0_i32, %c0_i32_0 : i32, i32
  }
  func.func @transform_6(%arg0: i32) -> (i32, i32) {
    %c0_i32 = arith.constant 0 : i32
    %c0_i32_0 = arith.constant 0 : i32
    %c0_i32_1 = arith.constant 0 : i32
    return %c0_i32, %c0_i32_0 : i32, i32
  }
  func.func @transform_7(%arg0: i32) -> (i32, i32) {
    %c0_i32 = arith.constant 0 : i32
    %c0_i32_0 = arith.constant 0 : i32
    %c0_i32_1 = arith.constant 0 : i32
    return %c0_i32, %c0_i32_0 : i32, i32
  }
  func.func @transform_8(%arg0: i32) -> (i32, i32) {
    %c0_i32 = arith.constant 0 : i32
    %c0_i32_0 = arith.constant 0 : i32
    %c0_i32_1 = arith.constant 0 : i32
    return %c0_i32, %c0_i32_0 : i32, i32
  }
  func.func @transform_9(%arg0: i32) -> (i32, i32) {
    %c0_i32 = arith.constant 0 : i32
    %c0_i32_0 = arith.constant 0 : i32
    return %arg0, %c0_i32 : i32, i32
  }
}

</mosaic_0001>

<bundles_post_ra>
// kernel: phi_net_forward.1
= control target key start
LH: loop header
LB: loop body
LE: loop exit
PB: predicated region body
PF: predicated region fallthrough
CT: control target
= control target key end

     0   :  { %14 = vsyncpa [#allocation3], 0  ;;  %s2355_s0 = inlined_call_operand.vmem [shape: f32[8,11], index: 0, kind: input, shape index: {}]   ;;  %s2356_s1 = inlined_call_operand.hbm [shape: f32[11,128], index: 1, kind: input, shape index: {}]   ;;  %s2357_s2 = inlined_call_operand.vmem [shape: f32[1,128], index: 2, kind: input, shape index: {}]   ;;  %s2358_s3 = inlined_call_operand.vmem [shape: f32[128,128], index: 3, kind: input, shape index: {}]   ;;  %s2359_s4 = inlined_call_operand.hbm [shape: f32[1,128], index: 4, kind: input, shape index: {}]   ;;  %s2360_s5 = inlined_call_operand.hbm [shape: f32[128,128], index: 5, kind: input, shape index: {}]   ;;  %s2361_s6 = inlined_call_operand.hbm [shape: f32[1,128], index: 6, kind: input, shape index: {}]   ;;  %s2362_s7 = inlined_call_operand.vmem [shape: f32[128,4], index: 7, kind: input, shape index: {}]   ;;  %s2363_s8 = inlined_call_operand.hbm [shape: f32[1,4], index: 8, kind: input, shape index: {}]   ;;  %s2364_s9 = inlined_call_operand.vmem [shape: f32[8,4], index: 9, kind: output, shape index: {}]  }
   0x1   :  { %15 = vsyncpa [#allocation5], 0  ;;  %s41_s11 = sshll.u32 %s2359_s4, 4  ;;  %s42_s11 = int_to_ptr.hbm [resolvable:$true] %s41_s11 }
   0x2   :  { %16 = vsyncpa [#allocation8], 0  ;;  %s1510_s12 = smov [#allocation4]   ;;  %s65_s16 = sshll.u32 %s2361_s6, 4  ;;  %s66_s16 = int_to_ptr.hbm [resolvable:$true] %s65_s16 }
   0x3   :  { %s43_s13 = sshll.u32 %s1510_s12, 4  ;;  %s1511_s17 = smov [#allocation7]   ;;  %s44_s13 = int_to_ptr.vmem [resolvable:$true] %s43_s13 }
   0x4   :  { %46 = dma.hbm_to_vmem [thread:$0]  %s42_s11, 16, %s44_s13, [#allocation5]  }
   0x5   :  { %s67_s18 = sshll.u32 %s1511_s17, 4  ;;  %s23_s21 = sshll.u32 %s2356_s1, 4  ;;  %s68_s18 = int_to_ptr.vmem [resolvable:$true] %s67_s18  ;;  %s24_s21 = int_to_ptr.hbm [resolvable:$true] %s23_s21 }
   0x6   :  { %70 = dma.hbm_to_vmem [thread:$0]  %s66_s16, 16, %s68_s18, [#allocation8]  }
   0x7   :  { %s1512_s4 = smov [#allocation2]   ;;  %s51_s25 = sshll.u32 %s2360_s5, 4  ;;  %s52_s25 = int_to_ptr.hbm [resolvable:$true] %s51_s25 }
   0x8   :  { %s25_s22 = sshll.u32 %s1512_s4, 4  ;;  %s1513_s26 = smov 128   ;;  %s26_s22 = int_to_ptr.vmem [resolvable:$true] %s25_s22 }
   0x9   :  { %s1514_s6 = smov 8   ;;  %s1515_s27 = smov [#allocation6]  }
   0xa   :  { %31 = dma.hbm_to_vmem [thread:$0]  %s24_s21, 256, %s26_s22, [#allocation3], %s1513_s26, %s1513_s26, %s1514_s6  }
   0xb   :  { %s53_s28 = sshll.u32 %s1515_s27, 4  ;;  %s78_s1 = sshll.u32 %s2363_s8, 4  ;;  %s54_s28 = int_to_ptr.vmem [resolvable:$true] %s53_s28  ;;  %s79_s1 = int_to_ptr.hbm [resolvable:$true] %s78_s1 }
   0xc   :  { %59 = dma.hbm_to_vmem [thread:$0]  %s52_s25, 2048, %s54_s28, [#allocation5], %s1513_s26, %s1513_s26, %s1514_s6  }
   0xd   :  { %s1516_s10 = smov [#allocation9]  }
   0xe   :  { %s80_s11 = sshll.u32 %s1516_s10, 4  ;;  %s81_s11 = int_to_ptr.vmem [resolvable:$true] %s80_s11 }
   0xf   :  { %83 = dma.hbm_to_vmem [thread:$0]  %s79_s1, 16, %s81_s11, [#allocation8]  }
  0x10   :  { %1504 = dma.done.wait [#allocation3], 256  }
  0x11   :  { %1505 = vsyncadd [#allocation3], 4294967040 }
  0x12   :  { %1506 = dma.done.wait [#allocation5], 2064  }
  0x13   :  { %1507 = vsyncadd [#allocation5], 4294965232 }
  0x14   :  { %1508 = dma.done.wait [#allocation8], 32  }
  0x15   :  { %1509 = vsyncadd [#allocation8], 4294967264  ;;  %vm115_vm0 = vcmask 1042432   ;;  %vm111_vm1 = vcmask 89088   ;;  %v106_v0 = vld [vmem:[#allocation2 + $0x8] sm:$0x7] }
  0x16   :  { %v105_v1 = vld [vmem:[#allocation2] sm:$0xff]  ;;  %v117_v3 = vsel %vm115_vm0, %v106_v0, 0  ;;  %v294_v6 = vld [vmem:[%s2358_s3 + $0x78] sm:$0xff]  ;;  %v293_v7 = vld [vmem:[%s2358_s3 + $0x70] sm:$0xff]  ;;  %vm1364_vm2 = vcmask 31744  }
  0x17   :  { %v104_v2 = vld [vmem:[%s2355_s0] sm:$0xff]  ;;  %v1585_v4 = vand.u32 4294901760, %v105_v1  ;;  %v292_v8 = vld [vmem:[%s2358_s3 + $0x68] sm:$0xff]  ;;  %v1596_v9 = vand.u32 4294901760, %v117_v3  ;;  %v1600_v11 = vand.u32 4294901760, %v294_v6  ;;  %v1602_v12 = vand.u32 4294901760, %v293_v7 }
  0x18   :  { %v113_v5 = vsel %vm111_vm1, %v104_v2, 0  ;;  %v291_v13 = vld [vmem:[%s2358_s3 + $0x60] sm:$0xff]  ;;  %v290_v14 = vld [vmem:[%s2358_s3 + $0x58] sm:$0xff]  ;;  %v1613_v16 = vand.u32 4294901760, %v292_v8  ;;  %v289_v34 = vld [vmem:[%s2358_s3 + $0x50] sm:$0xff] }
  0x19   :  { %v1598_v10 = vand.u32 4294901760, %v113_v5  ;;  %v1611_v15 = vsub.f32 %v105_v1, %v1585_v4  ;;  %v1615_v17 = vand.u32 4294901760, %v291_v13  ;;  %v1617_v18 = vand.u32 4294901760, %v290_v14  ;;  %134 = vmatpush.msra.mxu0 %v1596_v9  ;;  %300 = vmatpush.msra.mxu2 %v1600_v11  ;;  %v288_v39 = vld [vmem:[%s2358_s3 + $0x48] sm:$0xff]  ;;  %v287_v42 = vld [vmem:[%s2358_s3 + $0x40] sm:$0xff]  ;;  %v286_v43 = vld [vmem:[%s2358_s3 + $0x38] sm:$0xff] }
  0x1a   :  { %v161_v20 = vsub.f32 %v117_v3, %v1596_v9  ;;  %v1625_v21 = vsub.f32 %v294_v6, %v1600_v11  ;;  %v1628_v22 = vsub.f32 %v293_v7, %v1602_v12  ;;  %v1632_v24 = vsub.f32 %v292_v8, %v1613_v16  ;;  %v285_v44 = vld [vmem:[%s2358_s3 + $0x30] sm:$0xff]  ;;  %v284_v52 = vld [vmem:[%s2358_s3 + $0x28] sm:$0xff]  ;;  %v283_v60 = vld [vmem:[%s2358_s3 + $0x20] sm:$0xff] }
  0x1b   :  { %v1621_v19 = vsub.f32 %v113_v5, %v1598_v10  ;;  %v168_v23 = vand.u32 4294901760, %v1611_v15  ;;  %v1635_v25 = vsub.f32 %v291_v13, %v1615_v17  ;;  %v1639_v26 = vsub.f32 %v290_v14, %v1617_v18  ;;  %136 = vmatpush.msra.mxu0 %v1585_v4  ;;  %302 = vmatpush.msra.mxu2 %v1602_v12  ;;  %v282_v3 = vld [vmem:[%s2358_s3 + $0x18] sm:$0xff]  ;;  %v281_v13 = vld [vmem:[%s2358_s3 + $0x10] sm:$0xff] }
  0x1c   :  { %v162_v28 = vand.u32 4294901760, %v161_v20  ;;  %v342_v29 = vand.u32 4294901760, %v1625_v21  ;;  %v348_v30 = vand.u32 4294901760, %v1628_v22  ;;  %v354_v32 = vand.u32 4294901760, %v1632_v24 }
  0x1d   :  { %v139_v27 = vand.u32 4294901760, %v1621_v19  ;;  %193 = vmatpush.msrb.mxu0 %v161_v20  ;;  %v169_v31 = vsub.f32 %v1611_v15, %v168_v23  ;;  %v360_v33 = vand.u32 4294901760, %v1635_v25  ;;  %v366_v41 = vand.u32 4294901760, %v1639_v26  ;;  %304 = vmatpush.msra.mxu2 %v1613_v16 }
  0x1e   :  { %v163_v36 = vsub.f32 %v161_v20, %v162_v28  ;;  %v343_v37 = vsub.f32 %v1625_v21, %v342_v29  ;;  %v349_v38 = vsub.f32 %v1628_v22, %v348_v30  ;;  %v355_v40 = vsub.f32 %v1632_v24, %v354_v32 }
  0x1f   :  { %v140_v35 = vsub.f32 %v1621_v19, %v139_v27  ;;  %196 = vmatpush.msrb.mxu0 %v1611_v15  ;;  %v170_v47 = vand.u32 4294901760, %v169_v31  ;;  %v361_v50 = vsub.f32 %v1635_v25, %v360_v33  ;;  %v1682_v51 = vand.u32 4294901760, %v289_v34  ;;  %306 = vmatpush.msra.mxu2 %v1615_v17 }
  0x20   :  { %v164_v46 = vand.u32 4294901760, %v163_v36  ;;  %v344_v48 = vand.u32 4294901760, %v343_v37  ;;  %v350_v49 = vand.u32 4294901760, %v349_v38  ;;  %v1688_v53 = vand.u32 4294901760, %v288_v39 }
  0x21   :  { %v141_v45 = vand.u32 4294901760, %v140_v35  ;;  %v1690_v54 = vand.u32 4294901760, %v287_v42  ;;  %v1692_v55 = vand.u32 4294901760, %v286_v43  ;;  %v1694_v56 = vand.u32 4294901760, %v285_v44  ;;  %308 = vmatpush.msra.mxu2 %v1617_v18 }
  0x22   :  { %165 = vmatpush.msra.mxu1 %v164_v46  ;;  %345 = vmatpush.msra.mxu3 %v344_v48  ;;  %v356_v57 = vand.u32 4294901760, %v355_v40  ;;  %v367_v58 = vsub.f32 %v1639_v26, %v366_v41  ;;  %v1700_v59 = vsub.f32 %v289_v34, %v1682_v51  ;;  %v1706_v61 = vsub.f32 %v288_v39, %v1688_v53 }
  0x23   :  { %142 = vmatmul.f32.vlgmr.msra.gmra.mxu0 %v141_v45  ;;  %v1709_v62 = vsub.f32 %v287_v42, %v1690_v54  ;;  %v1713_v63 = vsub.f32 %v286_v43, %v1692_v55  ;;  %v1715_v0 = vand.u32 4294901760, %v284_v52  ;;  %v362_v1 = vand.u32 4294901760, %v361_v50  ;;  %310 = vmatpush.msra.mxu2 %v1682_v51 }
  0x24   :  { %245 = vmatpush.msra.mxu0 %v162_v28  ;;  %171 = vmatpush.msra.mxu1 %v170_v47  ;;  %v372_v2 = vand.u32 4294901760, %v1700_v59  ;;  %v378_v5 = vand.u32 4294901760, %v1706_v61  ;;  %v1726_v7 = vsub.f32 %v285_v44, %v1694_v56  ;;  %v1728_v8 = vand.u32 4294901760, %v283_v60 }
  0x25   :  { %173 = vmatmul.f32.vlgmr.msra.gmra.mxu1 %v1598_v10  ;;  %351 = vmatpush.msra.mxu3 %v350_v49  ;;  %v384_v6 = vand.u32 4294901760, %v1709_v62  ;;  %v368_v14 = vand.u32 4294901760, %v367_v58  ;;  %v1743_v28 = vsub.f32 %v284_v52, %v1715_v0  ;;  %v1745_v31 = vand.u32 4294901760, %v282_v3 }
  0x26   :  { %249 = vmatpush.msra.mxu0 %v168_v23  ;;  %218 = vmatpush.msrb.mxu1 %v1596_v9  ;;  %v373_v15 = vsub.f32 %v1700_v59, %v372_v2  ;;  %v379_v20 = vsub.f32 %v1706_v61, %v378_v5  ;;  %v390_v23 = vand.u32 4294901760, %v1713_v63  ;;  %v1749_v34 = vand.u32 4294901760, %v281_v13 }
  0x27   :  { %357 = vmatpush.msra.mxu3 %v356_v57  ;;  %312 = vmatpush.msra.mxu2 %v1688_v53  ;;  %v385_v36 = vsub.f32 %v1709_v62, %v384_v6  ;;  %v396_v37 = vand.u32 4294901760, %v1726_v7  ;;  %v1757_v38 = vsub.f32 %v283_v60, %v1728_v8  ;;  %v402_v40 = vand.u32 4294901760, %v1743_v28 }
  0x28   :  { %220 = vmatpush.msrb.mxu1 %v1585_v4  ;;  %v374_v35 = vand.u32 4294901760, %v373_v15  ;;  %v391_v39 = vsub.f32 %v1713_v63, %v390_v23  ;;  %v1766_v42 = vsub.f32 %v282_v3, %v1745_v31  ;;  %v1777_v45 = vsub.f32 %v281_v13, %v1749_v34  ;;  %v279_v13 = vld [vmem:[%s2358_s3] sm:$0xff] }
  0x29   :  { %363 = vmatpush.msra.mxu3 %v362_v1  ;;  %314 = vmatpush.msra.mxu2 %v1690_v54  ;;  %v397_v43 = vsub.f32 %v1726_v7, %v396_v37  ;;  %v408_v44 = vand.u32 4294901760, %v1757_v38  ;;  %v280_v1 = vld [vmem:[%s2358_s3 + $0x8] sm:$0xff]  ;;  %v329_v15 = vand.u32 4294901760, %v279_v13 }
  0x2a   :  { %270 = vmatpush.msra.mxu1 %v1596_v9  ;;  %v380_v9 = vand.u32 4294901760, %v379_v20  ;;  %v414_v46 = vand.u32 4294901760, %v1766_v42  ;;  %v420_v49 = vand.u32 4294901760, %v1777_v45  ;;  %v327_v3 = vand.u32 4294901760, %v280_v1 }
  0x2b   :  { %199 = vmatmul.f32.vlgmr.msrb.gmra.mxu0 %v1621_v19  ;;  %369 = vmatpush.msra.mxu3 %v368_v14  ;;  %v392_v19 = vand.u32 4294901760, %v391_v39  ;;  %v398_v47 = vand.u32 4294901760, %v397_v43  ;;  %v409_v48 = vsub.f32 %v1757_v38, %v408_v44 }
  0x2c   :  { %272 = vmatpush.msra.mxu1 %v1585_v4  ;;  %443 = vmatpush.msrb.mxu0 %v1625_v21  ;;  %v386_v4 = vand.u32 4294901760, %v385_v36  ;;  %v415_v52 = vsub.f32 %v1766_v42, %v414_v46  ;;  %v421_v58 = vsub.f32 %v1777_v45, %v420_v49  ;;  %v425_v14 = vsub.f32 %v280_v1, %v327_v3 }
  0x2d   :  { %224 = vmatmul.f32.vlgmr.msrb.gmra.mxu1 %v139_v27  ;;  %316 = vmatpush.msra.mxu2 %v1692_v55  ;;  %v403_v27 = vsub.f32 %v1743_v28, %v402_v40  ;;  %v410_v57 = vand.u32 4294901760, %v409_v48  ;;  %v648_v48 = vld [vmem:[#allocation6 + $0x38] sm:$0xff] }
  0x2e   :  { %375 = vmatpush.msra.mxu3 %v374_v35  ;;  %446 = vmatpush.msrb.mxu0 %v1628_v22  ;;  %v416_v60 = vand.u32 4294901760, %v415_v52  ;;  %v426_v20 = vand.u32 4294901760, %v425_v14  ;;  %v431_v35 = vsub.f32 %v279_v13, %v329_v15  ;;  %v656_v22 = vld [vmem:[#allocation6 + $0x78] sm:$0xff] }
  0x2f   :  { %318 = vmatpush.msra.mxu2 %v1694_v56  ;;  %496 = vmatpush.msrb.mxu1 %v1600_v11  ;;  %v404_v50 = vand.u32 4294901760, %v403_v27 }
  0x30   :  { %381 = vmatpush.msra.mxu3 %v380_v9  ;;  %449 = vmatpush.msrb.mxu0 %v1632_v24  ;;  %v427_v36 = vsub.f32 %v425_v14, %v426_v20  ;;  %v432_v9 = vand.u32 4294901760, %v431_v35  ;;  %v655_v24 = vld [vmem:[#allocation6 + $0x70] sm:$0xff] }
  0x31   :  { %320 = vmatpush.msra.mxu2 %v1715_v0  ;;  %498 = vmatpush.msrb.mxu1 %v1602_v12 }
  0x32   :  { %387 = vmatpush.msra.mxu3 %v386_v4  ;;  %452 = vmatpush.msrb.mxu0 %v1635_v25  ;;  %v428_v39 = vand.u32 4294901760, %v427_v36  ;;  %v433_v4 = vsub.f32 %v431_v35, %v432_v9  ;;  %v654_v25 = vld [vmem:[#allocation6 + $0x68] sm:$0xff] }
  0x33   :  { %251 = vmatmul.f32.vlgmr.msra.gmra.mxu0 %v1598_v10  ;;  %322 = vmatpush.msra.mxu2 %v1728_v8 }
  0x34   :  { %393 = vmatpush.msra.mxu3 %v392_v19  ;;  %500 = vmatpush.msrb.mxu1 %v1613_v16  ;;  %v434_v43 = vand.u32 4294901760, %v433_v4  ;;  %v644_v4 = vld [vmem:[#allocation6 + $0x18] sm:$0xff] }
  0x35   :  { %274 = vmatmul.f32.vlgmr.msra.gmra.mxu1 %v1598_v10  ;;  %324 = vmatpush.msra.mxu2 %v1745_v31  ;;  %v422_v10 = vand.u32 4294901760, %v421_v58 }
  0x36   :  { %399 = vmatpush.msra.mxu3 %v398_v47  ;;  %455 = vmatpush.msrb.mxu0 %v1639_v26 }
  0x37   :  { %502 = vmatpush.msrb.mxu1 %v1615_v17  ;;  %326 = vmatpush.msra.mxu2 %v1749_v34 }
  0x38   :  { %405 = vmatpush.msra.mxu3 %v404_v50  ;;  %458 = vmatpush.msrb.mxu0 %v1700_v59  ;;  %v650_v59 = vld [vmem:[#allocation6 + $0x48] sm:$0xff] }
  0x39   :  { %504 = vmatpush.msrb.mxu1 %v1617_v18  ;;  %328 = vmatpush.msra.mxu2 %v327_v3 }
  0x3a   :  { %411 = vmatpush.msra.mxu3 %v410_v57  ;;  %461 = vmatpush.msrb.mxu0 %v1706_v61  ;;  %v649_v61 = vld [vmem:[#allocation6 + $0x40] sm:$0xff] }
  0x3b   :  { %506 = vmatpush.msrb.mxu1 %v1682_v51  ;;  %330 = vmatpush.msra.mxu2 %v329_v15 }
  0x3c   :  { %417 = vmatpush.msra.mxu3 %v416_v60  ;;  %464 = vmatpush.msrb.mxu0 %v1709_v62  ;;  %v646_v60 = vld [vmem:[#allocation6 + $0x28] sm:$0xff] }
  0x3d   :  { %508 = vmatpush.msrb.mxu1 %v1688_v53  ;;  %537 = vmatpush.msrb.mxu2 %v342_v29 }
  0x3e   :  { %423 = vmatpush.msra.mxu3 %v422_v10  ;;  %467 = vmatpush.msrb.mxu0 %v1713_v63 }
  0x3f   :  { %510 = vmatpush.msrb.mxu1 %v1690_v54  ;;  %541 = vmatpush.msrb.mxu2 %v348_v30  ;;  %v1878_v30 = vand.u32 4294901760, %v656_v22 }
  0x40   :  { %470 = vmatpush.msrb.mxu0 %v1726_v7  ;;  %429 = vmatpush.msra.mxu3 %v428_v39  ;;  %v1953_v39 = vand.u32 4294901760, %v646_v60 }
  0x41   :  { %512 = vmatpush.msrb.mxu1 %v1692_v55  ;;  %545 = vmatpush.msrb.mxu2 %v354_v32  ;;  %v1880_v32 = vand.u32 4294901760, %v655_v24  ;;  %v1891_v62 = vsub.f32 %v656_v22, %v1878_v30 }
  0x42   :  { %473 = vmatpush.msrb.mxu0 %v1743_v28  ;;  %435 = vmatpush.msra.mxu3 %v434_v43 }
  0x43   :  { %514 = vmatpush.msrb.mxu1 %v1694_v56  ;;  %549 = vmatpush.msrb.mxu2 %v360_v33  ;;  %v1882_v33 = vand.u32 4294901760, %v654_v25  ;;  %v1894_v63 = vsub.f32 %v655_v24, %v1880_v32  ;;  %v704_v28 = vand.u32 4294901760, %v1891_v62  ;;  %v1970_v24 = vsub.f32 %v646_v60, %v1953_v39 }
  0x44   :  { %476 = vmatpush.msrb.mxu0 %v1757_v38  ;;  %604 = vmatpush.msrb.mxu3 %v1600_v11 }
  0x45   :  { %516 = vmatpush.msrb.mxu1 %v1715_v0  ;;  %553 = vmatpush.msrb.mxu2 %v366_v41  ;;  %v653_v41 = vld [vmem:[#allocation6 + $0x60] sm:$0xff] }
  0x46   :  { %479 = vmatpush.msrb.mxu0 %v1766_v42  ;;  %606 = vmatpush.msrb.mxu3 %v1602_v12  ;;  %v1380_v12 = vld [vmem:[%s2357_s2] ss:$0 sm:$0xff] }
  0x47   :  { %518 = vmatpush.msrb.mxu1 %v1728_v8  ;;  %557 = vmatpush.msrb.mxu2 %v372_v2  ;;  %v1900_v2 = vand.u32 4294901760, %v650_v59 }
  0x48   :  { %482 = vmatpush.msrb.mxu0 %v1777_v45  ;;  %608 = vmatpush.msrb.mxu3 %v1613_v16  ;;  %v705_v45 = vsub.f32 %v1891_v62, %v704_v28 }
  0x49   :  { %520 = vmatpush.msrb.mxu1 %v1745_v31  ;;  %561 = vmatpush.msrb.mxu2 %v378_v5  ;;  %v1920_v42 = vsub.f32 %v650_v59, %v1900_v2 }
  0x4a   :  { %485 = vmatpush.msrb.mxu0 %v425_v14  ;;  %610 = vmatpush.msrb.mxu3 %v1615_v17  ;;  %v706_v52 = vand.u32 4294901760, %v705_v45 }
  0x4b   :  { %522 = vmatpush.msrb.mxu1 %v1749_v34  ;;  %565 = vmatpush.msrb.mxu2 %v384_v6  ;;  %v740_v14 = vand.u32 4294901760, %v1920_v42 }
  0x4c   :  { %488 = vmatpush.msrb.mxu0 %v431_v35  ;;  %612 = vmatpush.msrb.mxu3 %v1617_v18 }
  0x4d   :  { %524 = vmatpush.msrb.mxu1 %v327_v3  ;;  %569 = vmatpush.msrb.mxu2 %v390_v23 }
  0x4e   :  { %614 = vmatpush.msrb.mxu3 %v1682_v51  ;;  %v652_v51 = vld [vmem:[#allocation6 + $0x58] sm:$0xff]  ;;  %662 = vmatpush.msra.mxu0 %v1878_v30 }
  0x4f   :  { %526 = vmatpush.msrb.mxu1 %v329_v15  ;;  %573 = vmatpush.msrb.mxu2 %v396_v37 }
  0x50   :  { %616 = vmatpush.msrb.mxu3 %v1688_v53  ;;  %v651_v53 = vld [vmem:[#allocation6 + $0x50] sm:$0xff]  ;;  %664 = vmatpush.msra.mxu0 %v1880_v32 }
  0x51   :  { %577 = vmatpush.msrb.mxu2 %v402_v40  ;;  %707 = vmatpush.msra.mxu1 %v706_v52 }
  0x52   :  { %618 = vmatpush.msrb.mxu3 %v1690_v54  ;;  %v1884_v54 = vand.u32 4294901760, %v653_v41  ;;  %666 = vmatpush.msra.mxu0 %v1882_v33 }
  0x53   :  { %581 = vmatpush.msrb.mxu2 %v408_v44 }
  0x54   :  { %620 = vmatpush.msrb.mxu3 %v1692_v55  ;;  %v1886_v55 = vand.u32 4294901760, %v652_v51  ;;  %v1903_v5 = vsub.f32 %v653_v41, %v1884_v54  ;;  %668 = vmatpush.msra.mxu0 %v1884_v54 }
  0x55   :  { %585 = vmatpush.msrb.mxu2 %v414_v46 }
  0x56   :  { %622 = vmatpush.msrb.mxu3 %v1694_v56  ;;  %v1888_v56 = vand.u32 4294901760, %v651_v53  ;;  %v1906_v6 = vsub.f32 %v652_v51, %v1886_v55  ;;  %v722_v38 = vand.u32 4294901760, %v1903_v5  ;;  %670 = vmatpush.msra.mxu0 %v1886_v55 }
  0x57   :  { %589 = vmatpush.msrb.mxu2 %v420_v49  ;;  %v647_v49 = vld [vmem:[#allocation6 + $0x30] sm:$0xff] }
  0x58   :  { %624 = vmatpush.msrb.mxu3 %v1715_v0  ;;  %v1897_v0 = vsub.f32 %v654_v25, %v1882_v33  ;;  %v1909_v7 = vsub.f32 %v651_v53, %v1888_v56  ;;  %v728_v40 = vand.u32 4294901760, %v1906_v6  ;;  %v723_v58 = vsub.f32 %v1903_v5, %v722_v38  ;;  %672 = vmatpush.msra.mxu0 %v1888_v56 }
  0x59   :  { %593 = vmatpush.msrb.mxu2 %v426_v20  ;;  %v1947_v20 = vand.u32 4294901760, %v647_v49  ;;  %v1972_v25 = vand.u32 4294901760, %v644_v4 }
  0x5a   :  { %626 = vmatpush.msrb.mxu3 %v1728_v8  ;;  %v1911_v8 = vand.u32 4294901760, %v649_v61  ;;  %v734_v46 = vand.u32 4294901760, %v1909_v7  ;;  %v729_v1 = vsub.f32 %v1906_v6, %v728_v40  ;;  %v724_v43 = vand.u32 4294901760, %v723_v58  ;;  %674 = vmatpush.msra.mxu0 %v1900_v2 }
  0x5b   :  { %597 = vmatpush.msrb.mxu2 %v432_v9 }
  0x5c   :  { %628 = vmatpush.msrb.mxu3 %v1745_v31  ;;  %v710_v31 = vand.u32 4294901760, %v1894_v63  ;;  %v1934_v47 = vsub.f32 %v649_v61, %v1911_v8  ;;  %v735_v36 = vsub.f32 %v1909_v7, %v734_v46  ;;  %676 = vmatpush.msra.mxu0 %v1911_v8 }
  0x5e   :  { %630 = vmatpush.msrb.mxu3 %v1749_v34  ;;  %v716_v34 = vand.u32 4294901760, %v1897_v0  ;;  %v711_v19 = vsub.f32 %v1894_v63, %v710_v31  ;;  %v746_v9 = vand.u32 4294901760, %v1934_v47 }
  0x60   :  { %632 = vmatpush.msrb.mxu3 %v327_v3  ;;  %v717_v27 = vsub.f32 %v1897_v0, %v716_v34  ;;  %v712_v57 = vand.u32 4294901760, %v711_v19  ;;  %v645_v3 = vld [vmem:[#allocation6 + $0x20] sm:$0xff]  ;;  %v747_v41 = vsub.f32 %v1934_v47, %v746_v9 }
  0x62   :  { %634 = vmatpush.msrb.mxu3 %v329_v15  ;;  %v718_v13 = vand.u32 4294901760, %v717_v27  ;;  %v1945_v15 = vand.u32 4294901760, %v648_v48  ;;  %713 = vmatpush.msra.mxu1 %v712_v57  ;;  %v748_v19 = vand.u32 4294901760, %v747_v41 }
  0x64   :  { %719 = vmatpush.msra.mxu1 %v718_v13  ;;  %678 = vmatpush.msra.mxu0 %v1945_v15 }
  0x66   :  { %725 = vmatpush.msra.mxu1 %v724_v43  ;;  %680 = vmatpush.msra.mxu0 %v1947_v20 }
  0x68   :  { %682 = vmatpush.msra.mxu0 %v1953_v39 }
  0xa0   :  { %v143_v11 = vpop.f32.mrf.mxu0 }
  0xa1   :  { %v144_v17 = vadd.f32 %v1380_v12, %v143_v11  ;;  %v1956_v11 = vsub.f32 %v648_v48, %v1945_v15  ;;  %v1960_v12 = vsub.f32 %v647_v49, %v1947_v20 }
  0xa2   :  { %v174_v16 = vpop.f32.mrf.mxu1 }
  0xa3   :  { %v175_v21 = vadd.f32 %v174_v16, %v144_v17  ;;  %v1962_v16 = vand.u32 4294901760, %v645_v3  ;;  %v752_v22 = vand.u32 4294901760, %v1956_v11  ;;  %v758_v51 = vand.u32 4294901760, %v1960_v12 }
  0xa5   :  { %v1980_v53 = vsub.f32 %v645_v3, %v1962_v16  ;;  %v759_v27 = vsub.f32 %v1960_v12, %v758_v51  ;;  %684 = vmatpush.msra.mxu0 %v1962_v16 }
  0xa7   :  { %v770_v48 = vand.u32 4294901760, %v1980_v53  ;;  %v760_v58 = vand.u32 4294901760, %v759_v27  ;;  %686 = vmatpush.msra.mxu0 %v1972_v25 }
  0xa8   :  { %v200_v18 = vpop.f32.mrf.mxu0 }
  0xa9   :  { %v201_v26 = vadd.f32 %v200_v18, %v175_v21  ;;  %v730_v18 = vand.u32 4294901760, %v729_v1  ;;  %v741_v21 = vsub.f32 %v1920_v42, %v740_v14  ;;  %v771_v60 = vsub.f32 %v1980_v53, %v770_v48 }
  0xaa   :  { %v225_v29 = vpop.f32.mrf.mxu1 }
  0xab   :  { %v226_v23 = vadd.f32 %v225_v29, %v201_v26  ;;  %v736_v29 = vand.u32 4294901760, %v735_v36  ;;  %731 = vmatpush.msra.mxu1 %v730_v18  ;;  %v742_v61 = vand.u32 4294901760, %v741_v21  ;;  %v772_v3 = vand.u32 4294901760, %v771_v60  ;;  %v641_v18 = vld [vmem:[#allocation6] sm:$0xff] }
  0xad   :  { %737 = vmatpush.msra.mxu1 %v736_v29  ;;  %v691_v29 = vand.u32 4294901760, %v641_v18 }
  0xaf   :  { %743 = vmatpush.msra.mxu1 %v742_v61  ;;  %v793_v61 = vsub.f32 %v641_v18, %v691_v29 }
  0xb0   :  { %v252_v37 = vpop.f32.mrf.mxu0 }
  0xb1   :  { %v253_v44 = vadd.f32 %v252_v37, %v226_v23  ;;  %v753_v23 = vsub.f32 %v1956_v11, %v752_v22  ;;  %v764_v37 = vand.u32 4294901760, %v1970_v24  ;;  %749 = vmatpush.msra.mxu1 %v748_v19  ;;  %v794_v19 = vand.u32 4294901760, %v793_v61 }
  0xb2   :  { %v275_v50 = vpop.f32.mrf.mxu1 }
  0xb3   :  { %v276_v10 = vadd.f32 %v275_v50, %v253_v44  ;;  %v1989_v44 = vsub.f32 %v644_v4, %v1972_v25  ;;  %v754_v50 = vand.u32 4294901760, %v753_v23  ;;  %v765_v52 = vsub.f32 %v1970_v24, %v764_v37  ;;  %v642_v4 = vld [vmem:[#allocation6 + $0x8] sm:$0xff] }
  0xb5   :  { %v278_v35 = vmax.f32 %v276_v10, 0.0  ;;  %v776_v57 = vand.u32 4294901760, %v1989_v44  ;;  %755 = vmatpush.msra.mxu1 %v754_v50  ;;  %v766_v10 = vand.u32 4294901760, %v765_v52 }
  0xb7   :  { %v331_v17 = vand.u32 4294901760, %v278_v35  ;;  %v777_v1 = vsub.f32 %v1989_v44, %v776_v57  ;;  %761 = vmatpush.msra.mxu1 %v760_v58 }
  0xb9   :  { %v332_v26 = vsub.f32 %v278_v35, %v331_v17  ;;  %437 = vmatmul.f32.vlgmr.msra.gmra.mxu3 %v331_v17  ;;  %767 = vmatpush.msra.mxu1 %v766_v10  ;;  %v778_v13 = vand.u32 4294901760, %v777_v1  ;;  %v643_v35 = vld [vmem:[#allocation6 + $0x10] sm:$0xff]  ;;  %v1010_v1 = vld [vmem:[%s2362_s7 + $0x38] sm:$0xff] }
  0xba   :  { %858 = vmatpush.msra.mxu3 %v1878_v30  ;;  %v687_v36 = vand.u32 4294901760, %v643_v35  ;;  %v1011_v10 = vld [vmem:[%s2362_s7 + $0x40] sm:$0xff] }
  0xbb   :  { %491 = vmatmul.f32.vlgmr.msrb.gmra.mxu0 %v332_v26  ;;  %v333_v59 = vand.u32 4294901760, %v332_v26  ;;  %773 = vmatpush.msra.mxu1 %v772_v3  ;;  %v1009_v3 = vld [vmem:[%s2362_s7 + $0x30] sm:$0xff] }
  0xbc   :  { %860 = vmatpush.msra.mxu3 %v1880_v32  ;;  %v781_v43 = vsub.f32 %v643_v35, %v687_v36  ;;  %688 = vmatpush.msra.mxu0 %v687_v36 }
  0xbd   :  { %530 = vmatmul.f32.vlgmr.msrb.gmra.mxu1 %v333_v59  ;;  %v334_v45 = vsub.f32 %v332_v26, %v333_v59 }
  0xbe   :  { %862 = vmatpush.msra.mxu3 %v1882_v33  ;;  %779 = vmatpush.msra.mxu1 %v778_v13  ;;  %v782_v21 = vand.u32 4294901760, %v781_v43 }
  0xbf   :  { %v335_v49 = vand.u32 4294901760, %v334_v45 }
  0xc0   :  { %864 = vmatpush.msra.mxu3 %v1884_v54  ;;  %v783_v41 = vsub.f32 %v781_v43, %v782_v21 }
  0xc1   :  { %336 = vmatmul.f32.vlgmr.msra.gmra.mxu2 %v335_v49  ;;  %636 = vmatmul.f32.vlgmr.msrb.gmra.mxu3 %v331_v17  ;;  %v795_v49 = vsub.f32 %v793_v61, %v794_v19 }
  0xc2   :  { %805 = vmatpush.msra.mxu2 %v1891_v62  ;;  %866 = vmatpush.msra.mxu3 %v1886_v55  ;;  %v784_v23 = vand.u32 4294901760, %v783_v41  ;;  %v1016_v62 = vld [vmem:[%s2362_s7 + $0x68] sm:$0xff]  ;;  %v2173_v41 = vand.u32 4294901760, %v1010_v1 }
  0xc3   :  { %v796_v50 = vand.u32 4294901760, %v795_v49 }
  0xc4   :  { %808 = vmatpush.msra.mxu2 %v1894_v63  ;;  %868 = vmatpush.msra.mxu3 %v1888_v56 }
  0xc5   :  { %785 = vmatpush.msra.mxu1 %v784_v23 }
  0xc6   :  { %811 = vmatpush.msra.mxu2 %v1897_v0  ;;  %870 = vmatpush.msra.mxu3 %v1900_v2 }
  0xc8   :  { %814 = vmatpush.msra.mxu2 %v1903_v5  ;;  %872 = vmatpush.msra.mxu3 %v1911_v8  ;;  %v1015_v5 = vld [vmem:[%s2362_s7 + $0x60] sm:$0xff] }
  0xc9   :  { %599 = vmatmul.f32.vlgmr.msrb.gmra.mxu2 %v331_v17  ;;  %v689_v17 = vand.u32 4294901760, %v642_v4 }
  0xca   :  { %817 = vmatpush.msra.mxu2 %v1906_v6  ;;  %874 = vmatpush.msra.mxu3 %v1945_v15  ;;  %v1014_v6 = vld [vmem:[%s2362_s7 + $0x58] sm:$0xff] }
  0xcb   :  { %v787_v26 = vsub.f32 %v642_v4, %v689_v17  ;;  %690 = vmatpush.msra.mxu0 %v689_v17  ;;  %v1008_v4 = vld [vmem:[%s2362_s7 + $0x28] sm:$0xff] }
  0xcc   :  { %820 = vmatpush.msra.mxu2 %v1909_v7  ;;  %876 = vmatpush.msra.mxu3 %v1947_v20  ;;  %v1013_v7 = vld [vmem:[%s2362_s7 + $0x50] sm:$0xff] }
  0xcd   :  { %v788_v59 = vand.u32 4294901760, %v787_v26  ;;  %692 = vmatpush.msra.mxu0 %v691_v29 }
  0xce   :  { %823 = vmatpush.msra.mxu2 %v1920_v42  ;;  %878 = vmatpush.msra.mxu3 %v1953_v39 }
  0xcf   :  { %899 = vmatpush.msrb.mxu0 %v704_v28  ;;  %v789_v45 = vsub.f32 %v787_v26, %v788_v59  ;;  %v2097_v28 = vand.u32 4294901760, %v1015_v5 }
  0xd0   :  { %826 = vmatpush.msra.mxu2 %v1934_v47  ;;  %880 = vmatpush.msra.mxu3 %v1962_v16 }
  0xd1   :  { %903 = vmatpush.msrb.mxu0 %v710_v31  ;;  %v790_v27 = vand.u32 4294901760, %v789_v45  ;;  %v2099_v31 = vand.u32 4294901760, %v1014_v6 }
  0xd2   :  { %829 = vmatpush.msra.mxu2 %v1956_v11  ;;  %882 = vmatpush.msra.mxu3 %v1972_v25 }
  0xd3   :  { %907 = vmatpush.msrb.mxu0 %v716_v34  ;;  %791 = vmatpush.msra.mxu1 %v790_v27  ;;  %v2101_v34 = vand.u32 4294901760, %v1013_v7  ;;  %v1006_v27 = vld [vmem:[%s2362_s7 + $0x18] sm:$0xff] }
  0xd4   :  { %832 = vmatpush.msra.mxu2 %v1960_v12  ;;  %884 = vmatpush.msra.mxu3 %v687_v36 }
  0xd5   :  { %911 = vmatpush.msrb.mxu0 %v722_v38  ;;  %797 = vmatpush.msra.mxu1 %v796_v50  ;;  %v1012_v38 = vld [vmem:[%s2362_s7 + $0x48] sm:$0xff]  ;;  %v2189_v50 = vsub.f32 %v1010_v1, %v2173_v41 }
  0xd6   :  { %835 = vmatpush.msra.mxu2 %v1970_v24  ;;  %886 = vmatpush.msra.mxu3 %v689_v17 }
  0xd7   :  { %966 = vmatpush.msrb.mxu1 %v1878_v30  ;;  %915 = vmatpush.msrb.mxu0 %v728_v40  ;;  %v1381_v30 = vld [vmem:[#allocation4] ss:$0 sm:$0xff] }
  0xd8   :  { %838 = vmatpush.msra.mxu2 %v1980_v53  ;;  %888 = vmatpush.msra.mxu3 %v691_v29 }
  0xd9   :  { %968 = vmatpush.msrb.mxu1 %v1880_v32  ;;  %919 = vmatpush.msrb.mxu0 %v734_v46 }
  0xda   :  { %841 = vmatpush.msra.mxu2 %v1989_v44 }
  0xdb   :  { %970 = vmatpush.msrb.mxu1 %v1882_v33  ;;  %923 = vmatpush.msrb.mxu0 %v740_v14  ;;  %v2116_v14 = vand.u32 4294901760, %v1012_v38 }
  0xdc   :  { %844 = vmatpush.msra.mxu2 %v781_v43 }
  0xdd   :  { %972 = vmatpush.msrb.mxu1 %v1884_v54  ;;  %927 = vmatpush.msrb.mxu0 %v746_v9  ;;  %v2122_v9 = vsub.f32 %v1014_v6, %v2099_v31  ;;  %v2134_v53 = vsub.f32 %v1012_v38, %v2116_v14 }
  0xde   :  { %847 = vmatpush.msra.mxu2 %v787_v26 }
  0xdf   :  { %974 = vmatpush.msrb.mxu1 %v1886_v55  ;;  %931 = vmatpush.msrb.mxu0 %v752_v22  ;;  %v1018_v55 = vld [vmem:[%s2362_s7 + $0x78] sm:$0xff]  ;;  %v1102_v18 = vand.u32 4294901760, %v2134_v53 }
  0xe0   :  { %850 = vmatpush.msra.mxu2 %v793_v61  ;;  %v2082_v63 = vand.u32 4294901760, %v1018_v55 }
  0xe1   :  { %976 = vmatpush.msrb.mxu1 %v1888_v56  ;;  %935 = vmatpush.msrb.mxu0 %v758_v51  ;;  %v1017_v56 = vld [vmem:[%s2362_s7 + $0x70] sm:$0xff]  ;;  %v1090_v51 = vand.u32 4294901760, %v2122_v9 }
  0xe2   :  { %v2084_v0 = vand.u32 4294901760, %v1017_v56  ;;  %v2107_v42 = vsub.f32 %v1018_v55, %v2082_v63  ;;  %1024 = vmatpush.msrb.mxu2 %v2082_v63 }
  0xe3   :  { %978 = vmatpush.msrb.mxu1 %v1900_v2  ;;  %939 = vmatpush.msrb.mxu0 %v764_v37  ;;  %v2086_v2 = vand.u32 4294901760, %v1016_v62 }
  0xe4   :  { %v2110_v46 = vsub.f32 %v1017_v56, %v2084_v0  ;;  %v1066_v12 = vand.u32 4294901760, %v2107_v42  ;;  %1026 = vmatpush.msrb.mxu2 %v2084_v0  ;;  %v1103_v56 = vsub.f32 %v2134_v53, %v1102_v18 }
  0xe5   :  { %980 = vmatpush.msrb.mxu1 %v1911_v8  ;;  %943 = vmatpush.msrb.mxu0 %v770_v48  ;;  %v2113_v47 = vsub.f32 %v1016_v62, %v2086_v2 }
  0xe6   :  { %v1067_v44 = vsub.f32 %v2107_v42, %v1066_v12  ;;  %1028 = vmatpush.msrb.mxu2 %v2086_v2 }
  0xe7   :  { %982 = vmatpush.msrb.mxu1 %v1945_v15  ;;  %947 = vmatpush.msrb.mxu0 %v776_v57  ;;  %v1078_v22 = vand.u32 4294901760, %v2113_v47 }
  0xe8   :  { %v1068_v35 = vand.u32 4294901760, %v1067_v44  ;;  %1030 = vmatpush.msrb.mxu2 %v2097_v28  ;;  %v1004_v44 = vld [vmem:[%s2362_s7 + $0x8] sm:$0xff] }
  0xe9   :  { %984 = vmatpush.msrb.mxu1 %v1947_v20  ;;  %951 = vmatpush.msrb.mxu0 %v782_v21  ;;  %v2119_v20 = vsub.f32 %v1015_v5, %v2097_v28  ;;  %v1079_v52 = vsub.f32 %v2113_v47, %v1078_v22  ;;  %v1007_v21 = vld [vmem:[%s2362_s7 + $0x20] sm:$0xff]  ;;  %v1114_v5 = vand.u32 4294901760, %v2189_v50 }
  0xea   :  { %1069 = vmatpush.msrb.mxu3 %v1068_v35  ;;  %1032 = vmatpush.msrb.mxu2 %v2099_v31 }
  0xeb   :  { %986 = vmatpush.msrb.mxu1 %v1953_v39  ;;  %955 = vmatpush.msrb.mxu0 %v788_v59  ;;  %v2125_v39 = vsub.f32 %v1013_v7, %v2101_v34  ;;  %v1080_v26 = vand.u32 4294901760, %v1079_v52  ;;  %v2175_v59 = vand.u32 4294901760, %v1009_v3  ;;  %v2211_v7 = vand.u32 4294901760, %v1006_v27 }
  0xec   :  { %1034 = vmatpush.msrb.mxu2 %v2101_v34  ;;  %v1115_v52 = vsub.f32 %v2189_v50, %v1114_v5 }
  0xed   :  { %988 = vmatpush.msrb.mxu1 %v1962_v16  ;;  %959 = vmatpush.msrb.mxu0 %v794_v19  ;;  %v1072_v16 = vand.u32 4294901760, %v2110_v46  ;;  %v1096_v60 = vand.u32 4294901760, %v2125_v39  ;;  %v2180_v19 = vand.u32 4294901760, %v1008_v4 }
  0xee   :  { %1036 = vmatpush.msrb.mxu2 %v2116_v14 }
  0xef   :  { %990 = vmatpush.msrb.mxu1 %v1972_v25  ;;  %v1084_v25 = vand.u32 4294901760, %v2119_v20  ;;  %v1073_v48 = vsub.f32 %v2110_v46, %v1072_v16  ;;  %v1097_v45 = vsub.f32 %v2125_v39, %v1096_v60  ;;  %v2209_v6 = vsub.f32 %v1008_v4, %v2180_v19 }
  0xf1   :  { %992 = vmatpush.msrb.mxu1 %v687_v36  ;;  %v1085_v58 = vsub.f32 %v2119_v20, %v1084_v25  ;;  %v1074_v36 = vand.u32 4294901760, %v1073_v48  ;;  %v1104_v48 = vand.u32 4294901760, %v1103_v56 }
  0xf3   :  { %994 = vmatpush.msrb.mxu1 %v689_v17  ;;  %v1091_v17 = vsub.f32 %v2122_v9, %v1090_v51  ;;  %v1086_v23 = vand.u32 4294901760, %v1085_v58  ;;  %1075 = vmatpush.msrb.mxu3 %v1074_v36  ;;  %v2235_v58 = vsub.f32 %v1006_v27, %v2211_v7  ;;  %v2246_v36 = vand.u32 4294901760, %v1004_v44 }
  0xf5   :  { %996 = vmatpush.msrb.mxu1 %v691_v29  ;;  %v2170_v29 = vand.u32 4294901760, %v1011_v10  ;;  %v1092_v55 = vand.u32 4294901760, %v1091_v17  ;;  %1081 = vmatpush.msrb.mxu3 %v1080_v26  ;;  %v2255_v26 = vsub.f32 %v1004_v44, %v2246_v36 }
  0xf7   :  { %v2186_v49 = vsub.f32 %v1011_v10, %v2170_v29  ;;  %1087 = vmatpush.msrb.mxu3 %v1086_v23  ;;  %1038 = vmatpush.msrb.mxu2 %v2170_v29 }
  0xf9   :  { %v1108_v62 = vand.u32 4294901760, %v2186_v49  ;;  %1093 = vmatpush.msrb.mxu3 %v1092_v55  ;;  %1040 = vmatpush.msrb.mxu2 %v2173_v41  ;;  %v1150_v55 = vand.u32 4294901760, %v2255_v26 }
  0xfb   :  { %1042 = vmatpush.msrb.mxu2 %v2175_v59 }
  0xfd   :  { %1044 = vmatpush.msrb.mxu2 %v2180_v19 }
 0x138   :  { %v492_v40 = vpop.f32.mrf.mxu0 }
 0x13a   :  { %v531_v11 = vpop.f32.mrf.mxu1 }
 0x13c   :  { %v438_v32 = vpop.f32.mrf.mxu3 }
 0x144   :  { %v337_v33 = vpop.f32.mrf.mxu2  ;;  %v637_v13 = vpop.f32.mrf.mxu3 }
 0x145   :  { %v338_v54 = vadd.f32 %v1381_v30, %v337_v33  ;;  %v2193_v30 = vsub.f32 %v1009_v3, %v2175_v59  ;;  %v1005_v33 = vld [vmem:[%s2362_s7 + $0x10] sm:$0xff] }
 0x146   :  { %v2215_v38 = vand.u32 4294901760, %v1005_v33 }
 0x147   :  { %v439_v8 = vadd.f32 %v438_v32, %v338_v54  ;;  %v2195_v32 = vand.u32 4294901760, %v1007_v21 }
 0x148   :  { %v2238_v1 = vsub.f32 %v1005_v33, %v2215_v38 }
 0x149   :  { %v493_v15 = vadd.f32 %v492_v40, %v439_v8  ;;  %v1098_v40 = vand.u32 4294901760, %v1097_v45  ;;  %1046 = vmatpush.msrb.mxu2 %v2195_v32 }
 0x14a   :  { %v1144_v45 = vand.u32 4294901760, %v2238_v1 }
 0x14b   :  { %v532_v24 = vadd.f32 %v531_v11, %v493_v15  ;;  %v1109_v15 = vsub.f32 %v2186_v49, %v1108_v62  ;;  %v1120_v11 = vand.u32 4294901760, %v2193_v30  ;;  %1099 = vmatpush.msrb.mxu3 %v1098_v40  ;;  %1048 = vmatpush.msrb.mxu2 %v2211_v7 }
 0x14c   :  { %v600_v37 = vpop.f32.mrf.mxu2 }
 0x14d   :  { %v601_v57 = vadd.f32 %v600_v37, %v532_v24  ;;  %v2223_v24 = vsub.f32 %v1007_v21, %v2195_v32  ;;  %v1110_v3 = vand.u32 4294901760, %v1109_v15  ;;  %1105 = vmatpush.msrb.mxu3 %v1104_v48  ;;  %v1138_v21 = vand.u32 4294901760, %v2235_v58  ;;  %1050 = vmatpush.msrb.mxu2 %v2215_v38 }
 0x14e   :  { %v1151_v15 = vsub.f32 %v2255_v26, %v1150_v55 }
 0x14f   :  { %v638_v43 = vadd.f32 %v637_v13, %v601_v57  ;;  %v1126_v57 = vand.u32 4294901760, %v2209_v6  ;;  %v1121_v13 = vsub.f32 %v2193_v30, %v1120_v11  ;;  %v1132_v35 = vand.u32 4294901760, %v2223_v24  ;;  %1111 = vmatpush.msrb.mxu3 %v1110_v3  ;;  %1052 = vmatpush.msrb.mxu2 %v2246_v36 }
 0x150   :  { %v1139_v33 = vsub.f32 %v2235_v58, %v1138_v21  ;;  %v1152_v44 = vand.u32 4294901760, %v1151_v15 }
 0x151   :  { %v640_v61 = vmax.f32 %v638_v43, 0.0  ;;  %v1116_v43 = vand.u32 4294901760, %v1115_v52  ;;  %v1127_v17 = vsub.f32 %v2209_v6, %v1126_v57  ;;  %v1133_v23 = vsub.f32 %v2223_v24, %v1132_v35 }
 0x152   :  { %v1140_v40 = vand.u32 4294901760, %v1139_v33 }
 0x153   :  { %v2200_v54 = vand.u32 4294901760, %v640_v61  ;;  %1117 = vmatpush.msrb.mxu3 %v1116_v43  ;;  %v1128_v27 = vand.u32 4294901760, %v1127_v17  ;;  %v1134_v56 = vand.u32 4294901760, %v1133_v23 }
 0x155   :  { %v694_v8 = vsub.f32 %v640_v61, %v2200_v54  ;;  %799 = vmatmul.f32.vlgmr.msra.gmra.mxu1 %v2200_v54  ;;  %v1122_v61 = vand.u32 4294901760, %v1121_v13 }
 0x156   :  { %1220 = vmatpush.msra.mxu1 %v2082_v63 }
 0x157   :  { %853 = vmatmul.f32.vlgmr.msra.gmra.mxu2 %v694_v8  ;;  %v695_v37 = vand.u32 4294901760, %v694_v8  ;;  %1123 = vmatpush.msrb.mxu3 %v1122_v61 }
 0x158   :  { %1222 = vmatpush.msra.mxu1 %v2084_v0 }
 0x159   :  { %892 = vmatmul.f32.vlgmr.msra.gmra.mxu3 %v695_v37  ;;  %v696_v10 = vsub.f32 %v694_v8, %v695_v37  ;;  %v1145_v8 = vsub.f32 %v2238_v1, %v1144_v45 }
 0x15a   :  { %1224 = vmatpush.msra.mxu1 %v2086_v2  ;;  %1129 = vmatpush.msrb.mxu3 %v1128_v27 }
 0x15b   :  { %v697_v4 = vand.u32 4294901760, %v696_v10  ;;  %v1146_v37 = vand.u32 4294901760, %v1145_v8 }
 0x15c   :  { %1226 = vmatpush.msra.mxu1 %v2097_v28  ;;  %1135 = vmatpush.msrb.mxu3 %v1134_v56 }
 0x15d   :  { %698 = vmatmul.f32.vlgmr.msra.gmra.mxu0 %v697_v4  ;;  %998 = vmatmul.f32.vlgmr.msrb.gmra.mxu1 %v2200_v54 }
 0x15e   :  { %1167 = vmatpush.msra.mxu0 %v2107_v42  ;;  %1228 = vmatpush.msra.mxu1 %v2099_v31 }
 0x15f   :  { %1141 = vmatpush.msrb.mxu3 %v1140_v40 }
 0x160   :  { %1170 = vmatpush.msra.mxu0 %v2110_v46  ;;  %1230 = vmatpush.msra.mxu1 %v2101_v34 }
 0x161   :  { %1147 = vmatpush.msrb.mxu3 %v1146_v37 }
 0x162   :  { %1173 = vmatpush.msra.mxu0 %v2113_v47  ;;  %1232 = vmatpush.msra.mxu1 %v2116_v14 }
 0x163   :  { %1153 = vmatpush.msrb.mxu3 %v1152_v44 }
 0x164   :  { %1176 = vmatpush.msra.mxu0 %v2119_v20  ;;  %1234 = vmatpush.msra.mxu1 %v2170_v29 }
 0x165   :  { %961 = vmatmul.f32.vlgmr.msrb.gmra.mxu0 %v2200_v54  ;;  %v1003_v54 = vld [vmem:[%s2362_s7] sm:$0xff] }
 0x166   :  { %1179 = vmatpush.msra.mxu0 %v2122_v9  ;;  %1236 = vmatpush.msra.mxu1 %v2173_v41  ;;  %v1053_v48 = vand.u32 4294901760, %v1003_v54 }
 0x168   :  { %1182 = vmatpush.msra.mxu0 %v2125_v39  ;;  %1238 = vmatpush.msra.mxu1 %v2175_v59  ;;  %v1155_v52 = vsub.f32 %v1003_v54, %v1053_v48 }
 0x169   :  { %1054 = vmatpush.msrb.mxu2 %v1053_v48 }
 0x16a   :  { %1185 = vmatpush.msra.mxu0 %v2134_v53  ;;  %1240 = vmatpush.msra.mxu1 %v2180_v19  ;;  %v1156_v10 = vand.u32 4294901760, %v1155_v52 }
 0x16b   :  { %1261 = vmatpush.msra.mxu2 %v1066_v12 }
 0x16c   :  { %1188 = vmatpush.msra.mxu0 %v2186_v49  ;;  %1242 = vmatpush.msra.mxu1 %v2195_v32  ;;  %v1157_v3 = vsub.f32 %v1155_v52, %v1156_v10 }
 0x16d   :  { %1265 = vmatpush.msra.mxu2 %v1072_v16 }
 0x16e   :  { %1191 = vmatpush.msra.mxu0 %v2189_v50  ;;  %1244 = vmatpush.msra.mxu1 %v2211_v7  ;;  %v1158_v13 = vand.u32 4294901760, %v1157_v3 }
 0x16f   :  { %1269 = vmatpush.msra.mxu2 %v1078_v22 }
 0x170   :  { %1194 = vmatpush.msra.mxu0 %v2193_v30  ;;  %1246 = vmatpush.msra.mxu1 %v2215_v38 }
 0x171   :  { %1273 = vmatpush.msra.mxu2 %v1084_v25  ;;  %1159 = vmatpush.msrb.mxu3 %v1158_v13 }
 0x172   :  { %1197 = vmatpush.msra.mxu0 %v2209_v6  ;;  %1248 = vmatpush.msra.mxu1 %v2246_v36 }
 0x173   :  { %1328 = vmatpush.msra.mxu3 %v2082_v63  ;;  %1277 = vmatpush.msra.mxu2 %v1090_v51  ;;  %v1382_v63 = vld [vmem:[#allocation7] ss:$0 sm:$0xff] }
 0x174   :  { %1200 = vmatpush.msra.mxu0 %v2223_v24  ;;  %1250 = vmatpush.msra.mxu1 %v1053_v48 }
 0x175   :  { %1330 = vmatpush.msra.mxu3 %v2084_v0  ;;  %1281 = vmatpush.msra.mxu2 %v1096_v60  ;;  %v1383_v60 = vld [vmem:[#allocation9] ss:$0 sm:$0xff] }
 0x176   :  { %1203 = vmatpush.msra.mxu0 %v2235_v58 }
 0x177   :  { %1332 = vmatpush.msra.mxu3 %v2086_v2  ;;  %1285 = vmatpush.msra.mxu2 %v1102_v18 }
 0x178   :  { %1206 = vmatpush.msra.mxu0 %v2238_v1 }
 0x179   :  { %1334 = vmatpush.msra.mxu3 %v2097_v28  ;;  %1289 = vmatpush.msra.mxu2 %v1108_v62 }
 0x17a   :  { %1209 = vmatpush.msra.mxu0 %v2255_v26 }
 0x17b   :  { %1336 = vmatpush.msra.mxu3 %v2099_v31  ;;  %1293 = vmatpush.msra.mxu2 %v1114_v5 }
 0x17c   :  { %1212 = vmatpush.msra.mxu0 %v1155_v52 }
 0x17d   :  { %1338 = vmatpush.msra.mxu3 %v2101_v34  ;;  %1297 = vmatpush.msra.mxu2 %v1120_v11 }
 0x17f   :  { %1340 = vmatpush.msra.mxu3 %v2116_v14  ;;  %1301 = vmatpush.msra.mxu2 %v1126_v57 }
 0x181   :  { %1342 = vmatpush.msra.mxu3 %v2170_v29  ;;  %1305 = vmatpush.msra.mxu2 %v1132_v35 }
 0x183   :  { %1344 = vmatpush.msra.mxu3 %v2173_v41  ;;  %1309 = vmatpush.msra.mxu2 %v1138_v21 }
 0x185   :  { %1346 = vmatpush.msra.mxu3 %v2175_v59  ;;  %1313 = vmatpush.msra.mxu2 %v1144_v45 }
 0x187   :  { %1348 = vmatpush.msra.mxu3 %v2180_v19  ;;  %1317 = vmatpush.msra.mxu2 %v1150_v55 }
 0x189   :  { %1350 = vmatpush.msra.mxu3 %v2195_v32  ;;  %1321 = vmatpush.msra.mxu2 %v1156_v10 }
 0x18b   :  { %1352 = vmatpush.msra.mxu3 %v2211_v7 }
 0x18d   :  { %1354 = vmatpush.msra.mxu3 %v2215_v38 }
 0x18f   :  { %1356 = vmatpush.msra.mxu3 %v2246_v36 }
 0x191   :  { %1358 = vmatpush.msra.mxu3 %v1053_v48 }
 0x1d2   :  { %v800_v0 = vpop.f32.mrf.mxu1 }
 0x1da   :  { %v699_v2 = vpop.f32.mrf.mxu0  ;;  %v854_v34 = vpop.f32.mrf.mxu2 }
 0x1db   :  { %v700_v28 = vadd.f32 %v1382_v63, %v699_v2  ;;  %v999_v9 = vpop.f32.mrf.mxu1 }
 0x1dc   :  { %v893_v46 = vpop.f32.mrf.mxu3 }
 0x1dd   :  { %v801_v31 = vadd.f32 %v800_v0, %v700_v28 }
 0x1df   :  { %v855_v42 = vadd.f32 %v854_v34, %v801_v31 }
 0x1e1   :  { %v894_v47 = vadd.f32 %v893_v46, %v855_v42 }
 0x1e2   :  { %v962_v14 = vpop.f32.mrf.mxu0 }
 0x1e3   :  { %v963_v20 = vadd.f32 %v962_v14, %v894_v47 }
 0x1e5   :  { %v1000_v39 = vadd.f32 %v999_v9, %v963_v20 }
 0x1e7   :  { %v1002_v12 = vmax.f32 %v1000_v39, 0.0 }
 0x1e9   :  { %v1055_v16 = vand.u32 4294901760, %v1002_v12 }
 0x1eb   :  { %v1056_v22 = vsub.f32 %v1002_v12, %v1055_v16  ;;  %1161 = vmatmul.f32.vlgmr.msrb.gmra.mxu3 %v1055_v16 }
 0x1ed   :  { %1215 = vmatmul.f32.vlgmr.msra.gmra.mxu0 %v1056_v22  ;;  %v1057_v25 = vand.u32 4294901760, %v1056_v22 }
 0x1ef   :  { %1254 = vmatmul.f32.vlgmr.msra.gmra.mxu1 %v1057_v25  ;;  %v1058_v51 = vsub.f32 %v1056_v22, %v1057_v25 }
 0x1f1   :  { %v1059_v53 = vand.u32 4294901760, %v1058_v51 }
 0x1f3   :  { %1060 = vmatmul.f32.vlgmr.msrb.gmra.mxu2 %v1059_v53  ;;  %1360 = vmatmul.f32.vlgmr.msra.gmra.mxu3 %v1055_v16 }
 0x1fb   :  { %1323 = vmatmul.f32.vlgmr.msra.gmra.mxu2 %v1055_v16 }
 0x26a   :  { %v1216_v19 = vpop.f32.mrf.mxu0 }
 0x26c   :  { %v1255_v50 = vpop.f32.mrf.mxu1 }
 0x26e   :  { %v1162_v18 = vpop.f32.mrf.mxu3 }
 0x276   :  { %v1061_v29 = vpop.f32.mrf.mxu2  ;;  %v1361_v5 = vpop.f32.mrf.mxu3 }
 0x277   :  { %v1062_v41 = vadd.f32 %v1383_v60, %v1061_v29 }
 0x279   :  { %v1163_v59 = vadd.f32 %v1162_v18, %v1062_v41 }
 0x27b   :  { %v1217_v49 = vadd.f32 %v1216_v19, %v1163_v59 }
 0x27d   :  { %v1256_v30 = vadd.f32 %v1255_v50, %v1217_v49 }
 0x27e   :  { %v1324_v32 = vpop.f32.mrf.mxu2 }
 0x27f   :  { %v1325_v62 = vadd.f32 %v1324_v32, %v1256_v30 }
 0x281   :  { %v1362_v6 = vadd.f32 %v1361_v5, %v1325_v62 }
 0x283   :  { %1365 = vst.msk [vmem:[%s2364_s9] sm:$0xff] %vm1364_vm2, %v1362_v6 }
 0x284   :  { %1370 = vsyncpa [#allocation3], 1 }
 0x285   :  { %1371 = vsyncpa [#allocation5], 1 }
 0x286   :  { %1372 = vsyncpa [#allocation8], 1 }

</bundles_post_ra>
